<compile_context>
chip_gen: v7x
topology: tpu7x:2x2x1
jax: 0.10.0
libtpu: 0.0.40
codegen_flags: <defaults>
</compile_context>

<pallas_src>
import functools
from typing import NamedTuple

import jax
import jax.numpy as jnp
from jax import lax
from jax.experimental import pallas as pl
from jax.experimental.pallas import tpu as pltpu


class SamplerOutput(NamedTuple):
    weight: jax.Array
    bias: jax.Array


def _round_up(x, m):
    return ((x + m - 1) // m) * m


# ---------------------------------------------------------------------------
# Pallas kernel: fused (weight-gen ++ bias-gen) linear:  out = emb @ W_T + b
# ---------------------------------------------------------------------------
def _fused_linear_kernel(x_ref, w_ref, b_ref, o_ref, *, dot_precision):
    # x_ref: (1, E), w_ref: (E, tn), b_ref: (1, tn), o_ref: (1, tn)
    x = x_ref[...].astype(w_ref.dtype)
    acc = jnp.dot(x, w_ref[...], precision=dot_precision,
                  preferred_element_type=jnp.float32)
    o_ref[...] = (acc + b_ref[...].astype(jnp.float32)).astype(o_ref.dtype)


def _hypernet_linear(x, w_t, b, *, dot_precision, max_block_n=4096):
    """x: (1, E), w_t: (E, N), b: (1, N)  ->  (1, N) float32."""
    E, N = w_t.shape
    kernel = functools.partial(_fused_linear_kernel, dot_precision=dot_precision)
    out_shape = jax.ShapeDtypeStruct((1, N), jnp.float32)
    cost = pl.CostEstimate(
        flops=2 * E * N,
        transcendentals=0,
        bytes_accessed=(x.size * x.dtype.itemsize
                        + w_t.size * w_t.dtype.itemsize
                        + b.size * b.dtype.itemsize
                        + N * 4),
    )

    if N <= max_block_n:
        # Single block: everything VMEM-resident, no grid / pipeline loop.
        return pl.pallas_call(
            kernel,
            out_shape=out_shape,
            in_specs=[pl.BlockSpec(memory_space=pltpu.MemorySpace.VMEM)] * 3,
            out_specs=pl.BlockSpec(memory_space=pltpu.MemorySpace.VMEM),
            cost_estimate=cost,
        )(x, w_t, b)

    # Large fused output: tile the lane (N) axis.  tn is a multiple of 128 and
    # sized so 2 (double-buffer) * E * tn * itemsize stays far below v7x's
    # scoped-VMEM budget; "parallel" lets v7x shard the tiles across its 2 TCs.
    tn = max_block_n
    grid = (pl.cdiv(N, tn),)
    return pl.pallas_call(
        kernel,
        out_shape=out_shape,
        grid=grid,
        in_specs=[
            pl.BlockSpec((1, E), lambda j: (0, 0)),
            pl.BlockSpec((E, tn), lambda j: (0, j)),
            pl.BlockSpec((1, tn), lambda j: (0, j)),
        ],
        out_specs=pl.BlockSpec((1, tn), lambda j: (0, j)),
        compiler_params=pltpu.CompilerParams(
            dimension_semantics=("parallel",)),
        cost_estimate=cost,
    )(x, w_t, b)


# ---------------------------------------------------------------------------
# Module: AdapterLayersHyperNet
# ---------------------------------------------------------------------------
class AdapterLayersHyperNet:
    """JAX/Pallas port of the PyTorch AdapterLayersHyperNet.

    weight_generator: Linear(E -> input_dim*output_dim)
    bias_generator:   Linear(E -> input_dim)
    Both fused into one (E, N_pad) matrix: columns [weight-gen | bias-gen | 0-pad].
    """

    def __init__(self, key, task_emb_dim, input_dim, output_dim, std=0.01,
                 param_dtype=jnp.bfloat16, max_block_n=4096):
        self.input_dim = input_dim
        self.output_dim = output_dim
        self.task_emb_dim = task_emb_dim
        self.n_weight = input_dim * output_dim
        self.n_bias = input_dim
        n_fused = self.n_weight + self.n_bias
        self.n_padded = max(128, _round_up(n_fused, 128))
        self.param_dtype = param_dtype
        self.max_block_n = max_block_n
        # bf16 x bf16 on the MXU accumulates in f32 natively; only force
        # HIGHEST for full-f32 params (avoids reduced-precision f32 passes).
        self.dot_precision = (lax.Precision.HIGHEST
                              if param_dtype == jnp.float32
                              else lax.Precision.DEFAULT)

        k_w, k_b = jax.random.split(key)
        # torch nn.Linear weight layout is (out_features, in_features);
        # init_linear_layer: weight ~ N(0, std), bias = 0.
        w_gen = jax.random.normal(
            k_w, (self.n_weight, task_emb_dim), jnp.float32) * std
        b_gen = jax.random.normal(
            k_b, (self.n_bias, task_emb_dim), jnp.float32) * std
        fused = jnp.zeros((task_emb_dim, self.n_padded), jnp.float32)
        fused = fused.at[:, : self.n_weight].set(w_gen.T)
        fused = fused.at[:, self.n_weight:n_fused].set(b_gen.T)
        self.fused_w_t = fused.astype(param_dtype)                  # (E, N_pad)
        # Both Linear biases are zero-initialized.
        self.fused_b = jnp.zeros((1, self.n_padded), param_dtype)   # (1, N_pad)

    @functools.partial(jax.jit, static_argnums=0)
    def __call__(self, embeddings):
        # embeddings: (E,) or (1, E) for one task/layer, as in the torch module.
        # TODO(synk): if many tasks/layers are evaluated, batch embeddings into
        # an (M, E) matrix and do one matmul instead of one call per embedding.
        emb = jnp.reshape(embeddings, (1, -1))
        fused_out = _hypernet_linear(
            emb, self.fused_w_t, self.fused_b,
            dot_precision=self.dot_precision,
            max_block_n=self.max_block_n)                 # (1, N_pad) f32
        w_flat = fused_out[0, : self.n_weight]
        b_flat = fused_out[0, self.n_weight: self.n_weight + self.n_bias]
        weight = w_flat.reshape(self.input_dim, self.output_dim)  # torch .view
        bias = b_flat                                             # (input_dim,)
        return SamplerOutput(weight=weight, bias=bias)


# ---------------------------------------------------------------------------
# Pure-JAX reference (same stored params / casts) for correctness check
# ---------------------------------------------------------------------------
def _reference(emb, net):
    emb = jnp.reshape(emb, (1, -1)).astype(net.param_dtype)
    fused = (jnp.dot(emb, net.fused_w_t, precision=net.dot_precision,
                     preferred_element_type=jnp.float32)
             + net.fused_b.astype(jnp.float32))
    w = fused[0, : net.n_weight].reshape(net.input_dim, net.output_dim)
    b = fused[0, net.n_weight: net.n_weight + net.n_bias]
    return SamplerOutput(weight=w, bias=b)


if __name__ == "__main__":
    key = jax.random.PRNGKey(0)
    k_params, k_emb = jax.random.split(key)

    # config.projected_task_embedding_dim = 32, adapter input_dim=16, output_dim=8
    task_emb_dim, input_dim, output_dim = 32, 16, 8
    embeddings = jax.random.normal(k_emb, (task_emb_dim,), jnp.float32)

    # Default path: bf16 params, fused single-block (no-grid) kernel.
    net = AdapterLayersHyperNet(k_params, task_emb_dim, input_dim, output_dim)
    out = net(embeddings)
    jax.block_until_ready(out)
    ref = _reference(embeddings, net)
    assert out.weight.shape == (input_dim, output_dim)
    assert out.bias.shape == (input_dim,)
    assert jnp.allclose(out.weight, ref.weight, atol=1e-4, rtol=1e-4)
    assert jnp.allclose(out.bias, ref.bias, atol=1e-4, rtol=1e-4)

    # f32 params + HIGHEST precision; also exercise the N-tiled "parallel"
    # grid path by forcing a 128-wide block (N_pad = 256 -> grid of 2).
    net32 = AdapterLayersHyperNet(k_params, task_emb_dim, input_dim, output_dim,
                                  param_dtype=jnp.float32, max_block_n=128)
    out32 = net32(embeddings)
    jax.block_until_ready(out32)
    ref32 = _reference(embeddings, net32)
    assert jnp.allclose(out32.weight, ref32.weight, atol=1e-5, rtol=1e-5)
    assert jnp.allclose(out32.bias, ref32.bias, atol=1e-5, rtol=1e-5)

    print("KERNEL_OK")
</pallas_src>

<mosaic_0001>
module attributes {stable_mosaic.version = 11 : i64} {
  func.func @_fused_linear_kernel(%arg0: memref<1x32xf32, #tpu.memory_space<vmem>>, %arg1: memref<32x256xbf16, #tpu.memory_space<vmem>>, %arg2: memref<1x256xbf16, #tpu.memory_space<vmem>>, %arg3: memref<1x256xf32, #tpu.memory_space<vmem>>) attributes {dimension_semantics = [], scalar_prefetch = 0 : i64, scratch_operands = 0 : i64, tpu.core_type = #tpu.core_type<tc>} {
    %c0 = arith.constant 0 : index
    %c0_0 = arith.constant 0 : index
    %0 = vector.load %arg0[%c0, %c0_0] : memref<1x32xf32, #tpu.memory_space<vmem>>, vector<1x32xf32>
    %1 = arith.truncf %0 : vector<1x32xf32> to vector<1x32xbf16>
    %c0_1 = arith.constant 0 : index
    %c0_2 = arith.constant 0 : index
    %2 = vector.load %arg1[%c0_1, %c0_2] : memref<32x256xbf16, #tpu.memory_space<vmem>>, vector<32x256xbf16>
    %cst = arith.constant dense<0.000000e+00> : vector<1x256xf32>
    %3 = tpu.matmul %1, %2, %cst {dimension_numbers = #tpu.dot_dimension_numbers<[1], [0], [0], [1], [0, 0, 1, 1], [], []>} : vector<1x32xbf16>, vector<32x256xbf16>, vector<1x256xf32> -> vector<1x256xf32>
    %c0_3 = arith.constant 0 : index
    %c0_4 = arith.constant 0 : index
    %4 = vector.load %arg2[%c0_3, %c0_4] : memref<1x256xbf16, #tpu.memory_space<vmem>>, vector<1x256xbf16>
    %5 = arith.extf %4 : vector<1x256xbf16> to vector<1x256xf32>
    %6 = arith.addf %3, %5 : vector<1x256xf32>
    %c0_5 = arith.constant 0 : index
    %c0_6 = arith.constant 0 : index
    %7 = vector.load %arg3[%c0_5, %c0_6] : memref<1x256xf32, #tpu.memory_space<vmem>>, vector<1x256xf32>
    tpu.vector_store %arg3[%c0_5, %c0_6], %6 {strides = array<i32>} : memref<1x256xf32, #tpu.memory_space<vmem>>, vector<1x256xf32>,
    return
  }
}

</mosaic_0001>

<bundles_post_ra>
// kernel: squeeze.3
= control target key start
LH: loop header
LB: loop body
LE: loop exit
PB: predicated region body
PF: predicated region fallthrough
CT: control target
= control target key end

     0   :  { %s130_s8 = smov 104   ;;  %s131_s9 = smov 112   ;;  %vm7_vm0 = vcmask 64512   ;;  %s221_s0 = inlined_call_operand.vmem [shape: f32[128], index: 0, kind: input, shape index: {}]   ;;  %s222_s1 = inlined_call_operand.vmem [shape: f32[16,8], index: 1, kind: output, shape index: {}]  }
   0x1   :  { %v4_v0 = vld [vmem:[%s221_s0] sm:$0x1]  ;;  %s129_s0 = smov 120   ;;  %s132_s10 = smov 96  }
   0x2   :  { %5 = vst [vmem:[#allocation0] sm:$0x1] %v4_v0  ;;  %s133_s11 = smov 88   ;;  %s134_s12 = smov 80  }
   0x3   :  { %s135_s13 = smov 72   ;;  %s136_s14 = smov 64  }
   0x4   :  { %s137_s17 = smov 56   ;;  %s138_s18 = smov 48  }
   0x5   :  { %s139_s19 = smov 40   ;;  %s140_s20 = smov 32  }
   0x6   :  { %s141_s21 = smov 24   ;;  %s142_s22 = smov 16  }
   0x7   :  { %s143_s23 = smov 8  }
   0x9   :  { %v9_v1 = vld [vmem:[#allocation0] sm:$0x1]  }
   0xa   :  { %v21_v2 = vld [vmem:[#allocation0] sm:$0x1]   ;;  %10 = vrot.lane.b32.xlu0 %v9_v1, %s129_s0 }
   0xb   :  { %22 = vrot.lane.b32.xlu1 %v21_v2, %s130_s8  ;;  %v15_v3 = vld [vmem:[#allocation0] sm:$0x1]  }
   0xc   :  { %v27_v4 = vld [vmem:[#allocation0] sm:$0x1]  }
   0xd   :  { %v33_v5 = vld [vmem:[#allocation0] sm:$0x1]  }
   0xe   :  { %16 = vrot.lane.b32.xlu0 %v15_v3, %s131_s9  ;;  %v39_v6 = vld [vmem:[#allocation0] sm:$0x1]  }
   0xf   :  { %28 = vrot.lane.b32.xlu1 %v27_v4, %s132_s10  ;;  %v45_v7 = vld [vmem:[#allocation0] sm:$0x1]  }
  0x10   :  { %v51_v8 = vld [vmem:[#allocation0] sm:$0x1]  }
  0x11   :  { %v57_v9 = vld [vmem:[#allocation0] sm:$0x1]  }
  0x12   :  { %34 = vrot.lane.b32.xlu0 %v33_v5, %s133_s11  ;;  %v63_v10 = vld [vmem:[#allocation0] sm:$0x1]  }
  0x13   :  { %40 = vrot.lane.b32.xlu1 %v39_v6, %s134_s12  ;;  %v6_v11 = vld [vmem:[#allocation0] sm:$0x1]  }
  0x14   :  { %8 = vst.msk [vmem:[%s222_s1] sm:$0x1] %vm7_vm0, %v6_v11   ;;  %v69_v12 = vld [vmem:[#allocation0] sm:$0x1]  }
  0x15   :  { %v75_v13 = vld [vmem:[#allocation0] sm:$0x1]  }
  0x16   :  { %46 = vrot.lane.b32.xlu0 %v45_v7, %s135_s13  ;;  %v81_v14 = vld [vmem:[#allocation0] sm:$0x1]  }
  0x17   :  { %52 = vrot.lane.b32.xlu1 %v51_v8, %s136_s14  ;;  %v87_v15 = vld [vmem:[#allocation0] sm:$0x1]  }
  0x18   :  { %v93_v16 = vld [vmem:[#allocation0] sm:$0x1]  }
  0x1a   :  { %58 = vrot.lane.b32.xlu0 %v57_v9, %s137_s17 }
  0x1b   :  { %64 = vrot.lane.b32.xlu1 %v63_v10, %s138_s18 }
  0x1e   :  { %70 = vrot.lane.b32.xlu0 %v69_v12, %s139_s19 }
  0x1f   :  { %76 = vrot.lane.b32.xlu1 %v75_v13, %s140_s20 }
  0x22   :  { %82 = vrot.lane.b32.xlu0 %v81_v14, %s141_s21 }
  0x23   :  { %88 = vrot.lane.b32.xlu1 %v87_v15, %s142_s22 }
  0x26   :  { %94 = vrot.lane.b32.xlu0 %v93_v16, %s143_s23 }
  0x7c   :  { %v11_v17 = vpop.permute.xlu0 %10  }
  0x7d   :  { %v23_v18 = vpop.permute.xlu1 %22   ;;  %99 = vst.msk [vmem:[%s222_s1 + $0x1] sm:$0x1] %vm7_vm0, %v11_v17  }
  0x7e   :  { %101 = vst.msk [vmem:[%s222_s1 + $0x3] sm:$0x1] %vm7_vm0, %v23_v18  }
  0x80   :  { %v17_v19 = vpop.permute.xlu0 %16  }
  0x81   :  { %v29_v20 = vpop.permute.xlu1 %28   ;;  %100 = vst.msk [vmem:[%s222_s1 + $0x2] sm:$0x1] %vm7_vm0, %v17_v19  }
  0x82   :  { %102 = vst.msk [vmem:[%s222_s1 + $0x4] sm:$0x1] %vm7_vm0, %v29_v20  }
  0x84   :  { %v35_v21 = vpop.permute.xlu0 %34  }
  0x85   :  { %v41_v22 = vpop.permute.xlu1 %40   ;;  %103 = vst.msk [vmem:[%s222_s1 + $0x5] sm:$0x1] %vm7_vm0, %v35_v21  }
  0x86   :  { %104 = vst.msk [vmem:[%s222_s1 + $0x6] sm:$0x1] %vm7_vm0, %v41_v22  }
  0x88   :  { %v47_v23 = vpop.permute.xlu0 %46  }
  0x89   :  { %v53_v24 = vpop.permute.xlu1 %52   ;;  %105 = vst.msk [vmem:[%s222_s1 + $0x7] sm:$0x1] %vm7_vm0, %v47_v23  }
  0x8a   :  { %106 = vst.msk [vmem:[%s222_s1 + $0x8] sm:$0x1] %vm7_vm0, %v53_v24  }
  0x8c   :  { %v59_v25 = vpop.permute.xlu0 %58  }
  0x8d   :  { %v65_v26 = vpop.permute.xlu1 %64   ;;  %107 = vst.msk [vmem:[%s222_s1 + $0x9] sm:$0x1] %vm7_vm0, %v59_v25  }
  0x8e   :  { %108 = vst.msk [vmem:[%s222_s1 + $0xa] sm:$0x1] %vm7_vm0, %v65_v26  }
  0x90   :  { %v71_v27 = vpop.permute.xlu0 %70  }
  0x91   :  { %v77_v28 = vpop.permute.xlu1 %76   ;;  %109 = vst.msk [vmem:[%s222_s1 + $0xb] sm:$0x1] %vm7_vm0, %v71_v27  }
  0x92   :  { %110 = vst.msk [vmem:[%s222_s1 + $0xc] sm:$0x1] %vm7_vm0, %v77_v28  }
  0x94   :  { %v83_v29 = vpop.permute.xlu0 %82  }
  0x95   :  { %v89_v30 = vpop.permute.xlu1 %88   ;;  %111 = vst.msk [vmem:[%s222_s1 + $0xd] sm:$0x1] %vm7_vm0, %v83_v29  }
  0x96   :  { %112 = vst.msk [vmem:[%s222_s1 + $0xe] sm:$0x1] %vm7_vm0, %v89_v30  }
  0x98   :  { %v95_v31 = vpop.permute.xlu0 %94  }
  0x99   :  { %113 = vst.msk [vmem:[%s222_s1 + $0xf] sm:$0x1] %vm7_vm0, %v95_v31  }

// kernel: a_call__.1
= control target key start
LH: loop header
LB: loop body
LE: loop exit
PB: predicated region body
PF: predicated region fallthrough
CT: control target
= control target key end

     0   :  { %v139_v1 = vmov 0   ;;  %vm54_vm0 = vcmask 261120   ;;  %v44_v7 = vlaneseq  ;;  %v140_v13 = vmov 1966171168   ;;  %s182_s1 = inlined_call_operand.vmem [shape: bf16[32,256], index: 1, kind: input, shape index: {}]   ;;  %s183_s0 = inlined_call_operand.vmem [shape: f32[1,32], index: 0, kind: input, shape index: {}]   ;;  %s184_s2 = inlined_call_operand.vmem [shape: bf16[1,256], index: 2, kind: input, shape index: {}]   ;;  %s185_s3 = inlined_call_operand.vmem [shape: f32[1,256], index: 3, kind: output, shape index: {}]  }
   0x1   :  { %v133_v0 = vld [vmem:[%s182_s1 + $0x4] ss:$8 sps:$4 sm:$0xff]   ;;  %90 = vmatprep.mubr.bf16.mxu0 %v139_v1  ;;  %v135_v2 = vld [vmem:[%s182_s1] ss:$8 sps:$4 sm:$0xff]   ;;  %v136_v3 = vld [vmem:[%s182_s1 + $0x14] ss:$8 sps:$4 sm:$0xff]   ;;  %v103_v14 = vunpack.c.l.s4 %v140_v13 }
   0x2   :  { %58 = vmatprep.subr.bf16.mxu0 %v133_v0  ;;  %v138_v4 = vld [vmem:[%s182_s1 + $0x10] ss:$8 sps:$4 sm:$0xff]   ;;  %v15_v5 = vld [vmem:[%s183_s0] sm:$0x1]  ;;  %v45_v8 = vshrl.u32 %v44_v7, 7  ;;  %vm119_vm1 = vcmp.lt.s32.totalorder %v44_v7, 256 }
   0x3   :  { %59 = vmatpush1.bf16.msra.mxu0 %v135_v2  ;;  %v16_v6 = vpack.c.bf16 %v15_v5, %v15_v5  ;;  %v21_v9 = vld [vmem:[%s184_s2] sm:$0x3]  ;;  %v104_v17 = vunpack.c.0.s8 %v103_v14 }
   0x4   :  { %60 = vmatprep.subr.bf16.mxu0 %v136_v3  ;;  %v22_v10 = vunpack.c.l.bf16 %v21_v9  ;;  %v46_v11 = vsub.s32 0, %v45_v8  ;;  %v50_v12 = vsub.s32 2, %v45_v8 }
   0x5   :  { %v107_v22 = vsub.s32 %v104_v17, %v45_v8 }
   0x6   :  { %v47_v15 = vrot.slane %v22_v10, %v46_v11  ;;  %v51_v16 = vrot.slane %v22_v10, %v50_v12 }
   0x7   :  { %61 = vmatpush1.bf16.msra.mxu0 %v138_v4 }
   0xa   :  { %130 = vmatmul.mubr.msk.bf16.vlgmr.msra.gmra.mrb[0].mxu0 %vm54_vm0, %v16_v6 }
  0xdd   :  { %v92_v18 = vpop.f32.mrb[0].mxu0 }
  0xde   :  { %v93_v19 = vadd.f32 %v92_v18, %v47_v15  ;;  %v94_v20 = vpop.f32.mrb[1].mxu0 }
  0xdf   :  { %v95_v21 = vadd.f32 %v94_v20, %v51_v16  ;;  %v96_v23 = vpop.f32.mrb[2].mxu0 }
  0xe0   :  { %v97_v24 = vpop.f32.mrb[3].mxu0 }
  0xe1   :  { %v101_v25 = vcombine.low %v93_v19, %v95_v21 }
  0xe3   :  { %v108_v26 = vrot.slane %v101_v25, %v107_v22 }
  0xe5   :  { %v115_v27 = vrot.slane %v108_v26, %v107_v22 }
  0xe7   :  { %121 = vst.msk [vmem:[%s185_s3] sm:$0x3] %vm119_vm1, %v115_v27 }

</bundles_post_ra>
